<compile_context>
chip_gen: v5e
topology: v5e:2x2
jax: 0.10.0
libtpu: 0.0.40
codegen_flags: <defaults>
</compile_context>

<pallas_src>
import jax
import jax.numpy as jnp
from jax import lax
from jax.experimental import pallas as pl
from jax.experimental.pallas import tpu as pltpu


def _round_up(x, m):
    return ((x + m - 1) // m) * m


def _rbf_kernel(obs_ref, c_ref, csq_ref, scale_ref, w_ref, b_ref, out_ref):
    x = obs_ref[...]                                         # (TB, D)
    C = c_ref[...]                                           # (Kp, D)

    # Squared distance via matmul expansion (MXU), no (TB,Kp,D) intermediate:
    #   r[b,k] = ||x_b||^2 + ||C_k||^2 - 2 <x_b, C_k>
    xx = jnp.sum(x * x, axis=-1, keepdims=True)              # (TB, 1)
    xc = lax.dot_general(x, C, (((1,), (1,)), ((), ())),
                         preferred_element_type=jnp.float32)  # (TB, Kp)
    r = jnp.maximum(xx + csq_ref[...] - 2.0 * xc, 0.0)       # (TB, Kp)

    # scale = -1/(2*|sigma^2|) precomputed K-wide in the wrapper (loop-invariant).
    phi = jnp.exp(r * scale_ref[...])                        # (TB, Kp)

    # phi @ w.T without transposing w in-kernel: contract K axis against K axis.
    q = lax.dot_general(phi, w_ref[...], (((1,), (1,)), ((), ())),
                        preferred_element_type=jnp.float32)   # (TB, Ap)

    out_ref[...] = q + b_ref[...]                            # single lane-dense store


def action_value_dis_forward(obs, params, *, block_b=256):
    """ActionValueDis.forward: Q-values for all discrete actions, shape (B, act_dim)."""
    obs = obs.astype(jnp.float32)
    B, D = obs.shape
    A, K = params["w"].shape

    # Lane-dense padding (exact: padded w entries are 0, padded sigma2 = 1,
    # padded C rows = 0). Padded outputs/rows are sliced off at the end.
    Kp = _round_up(K, 128)
    Ap = _round_up(A, 128)
    TB = min(block_b, _round_up(B, 8))        # batch tile, multiple of 8
    Bp = _round_up(B, TB)

    C = jnp.zeros((Kp, D), jnp.float32).at[:K, :].set(
        params["C"].astype(jnp.float32))
    sig = jnp.ones((1, Kp), jnp.float32).at[:, :K].set(
        params["sigma_square"].astype(jnp.float32))
    w = jnp.zeros((Ap, Kp), jnp.float32).at[:A, :K].set(
        params["w"].astype(jnp.float32))
    b = jnp.zeros((1, Ap), jnp.float32).at[:, :A].set(
        params["b"].astype(jnp.float32))
    obs_p = jnp.zeros((Bp, D), jnp.float32).at[:B, :].set(obs)

    # K-wide, grid-invariant prep hoisted out of the batch grid loop.
    scale = -0.5 / jnp.abs(sig)                # (1, Kp)
    c_sq = jnp.sum(C * C, axis=-1)[None, :]    # (1, Kp)

    grid = (Bp // TB,)
    out = pl.pallas_call(
        _rbf_kernel,
        out_shape=jax.ShapeDtypeStruct((Bp, Ap), jnp.float32),
        grid=grid,
        in_specs=[
            pl.BlockSpec((TB, D), lambda i: (i, 0)),    # obs tile (pipelined)
            pl.BlockSpec((Kp, D), lambda i: (0, 0)),    # C        (resident)
            pl.BlockSpec((1, Kp), lambda i: (0, 0)),    # ||C||^2  (resident)
            pl.BlockSpec((1, Kp), lambda i: (0, 0)),    # scale    (resident)
            pl.BlockSpec((Ap, Kp), lambda i: (0, 0)),   # w        (resident)
            pl.BlockSpec((1, Ap), lambda i: (0, 0)),    # b        (resident)
        ],
        out_specs=pl.BlockSpec((TB, Ap), lambda i: (i, 0)),
        compiler_params=pltpu.CompilerParams(
            dimension_semantics=("parallel",)),
    )(obs_p, C, c_sq, scale, w, b)

    return out[:B, :A]


def make_params(key, obs_dim, act_dim, num_kernel):
    """Deterministic synthetic parameters matching the torch shapes (squeezed)."""
    ks = jax.random.split(key, 4)

    def randn(k, shape):
        return jax.random.normal(k, shape, dtype=jnp.float32)

    return {
        "C": randn(ks[0], (num_kernel, obs_dim)),
        "sigma_square": jnp.abs(randn(ks[1], (1, num_kernel))) + 0.1,
        "w": randn(ks[2], (act_dim, num_kernel)),
        "b": randn(ks[3], (1, act_dim)),
    }


def _reference(obs, params):
    # Direct translation of the torch RBF.forward (broadcast-diff form).
    r = jnp.sum((obs[:, None, :] - params["C"][None, :, :]) ** 2, axis=-1)
    phi = jnp.exp(-r / (2.0 * jnp.abs(params["sigma_square"])))
    return phi @ params["w"].T + params["b"]


if __name__ == "__main__":
    obs_dim, act_dim, num_kernel = 16, 4, 8
    batch = 2

    key = jax.random.PRNGKey(0)
    k_obs, k_par = jax.random.split(key)
    obs = jax.random.normal(k_obs, (batch, obs_dim), dtype=jnp.float32)
    params = make_params(k_par, obs_dim, act_dim, num_kernel)

    # NOTE: action_distribution_cls / act limits are not used in forward(); omitted.
    out = action_value_dis_forward(obs, params)
    out = jax.block_until_ready(out)

    ref = _reference(obs, params)
    assert out.shape == (batch, act_dim)
    assert jnp.allclose(out, ref, atol=1e-4, rtol=1e-4), float(
        jnp.max(jnp.abs(out - ref)))
    print("KERNEL_OK")
</pallas_src>

<mosaic_0001>
module attributes {stable_mosaic.version = 11 : i64} {
  func.func @_rbf_kernel(%arg0: i32, %arg1: memref<8x16xf32, #tpu.memory_space<vmem>>, %arg2: memref<128x16xf32, #tpu.memory_space<vmem>>, %arg3: memref<1x128xf32, #tpu.memory_space<vmem>>, %arg4: memref<1x128xf32, #tpu.memory_space<vmem>>, %arg5: memref<128x128xf32, #tpu.memory_space<vmem>>, %arg6: memref<1x128xf32, #tpu.memory_space<vmem>>, %arg7: memref<8x128xf32, #tpu.memory_space<vmem>>) attributes {dimension_semantics = [#tpu.dimension_semantics<parallel>], iteration_bounds = array<i64: 1>, scalar_prefetch = 0 : i64, scratch_operands = 0 : i64, tpu.core_type = #tpu.core_type<tc>, window_params = [{transform_indices = @transform_0, window_bounds = array<i64: 8, 16>}, {pipeline_mode = #tpu.pipeline_mode<synchronous>, transform_indices = @transform_1, window_bounds = array<i64: 128, 16>}, {pipeline_mode = #tpu.pipeline_mode<synchronous>, transform_indices = @transform_2, window_bounds = array<i64: 1, 128>}, {pipeline_mode = #tpu.pipeline_mode<synchronous>, transform_indices = @transform_3, window_bounds = array<i64: 1, 128>}, {pipeline_mode = #tpu.pipeline_mode<synchronous>, transform_indices = @transform_4, window_bounds = array<i64: 128, 128>}, {pipeline_mode = #tpu.pipeline_mode<synchronous>, transform_indices = @transform_5, window_bounds = array<i64: 1, 128>}, {transform_indices = @transform_6, window_bounds = array<i64: 8, 128>}]} {
    %c0 = arith.constant 0 : index
    %c0_0 = arith.constant 0 : index
    %0 = vector.load %arg1[%c0, %c0_0] : memref<8x16xf32, #tpu.memory_space<vmem>>, vector<8x16xf32>
    %c0_1 = arith.constant 0 : index
    %c0_2 = arith.constant 0 : index
    %1 = vector.load %arg2[%c0_1, %c0_2] : memref<128x16xf32, #tpu.memory_space<vmem>>, vector<128x16xf32>
    %2 = arith.mulf %0, %0 : vector<8x16xf32>
    %cst = arith.constant dense<0.000000e+00> : vector<8xf32>
    %3 = vector.multi_reduction <add>, %2, %cst [1] : vector<8x16xf32> to vector<8xf32>
    %4 = vector.shape_cast %3 : vector<8xf32> to vector<8x1xf32>
    %cst_3 = arith.constant dense<0.000000e+00> : vector<8x128xf32>
    %5 = tpu.matmul %0, %1, %cst_3 {dimension_numbers = #tpu.dot_dimension_numbers<[1], [1], [0], [0], [0, 0, 1, 0], [], []>} : vector<8x16xf32>, vector<128x16xf32>, vector<8x128xf32> -> vector<8x128xf32>
    %c0_4 = arith.constant 0 : index
    %c0_5 = arith.constant 0 : index
    %6 = vector.load %arg3[%c0_4, %c0_5] : memref<1x128xf32, #tpu.memory_space<vmem>>, vector<1x128xf32>
    %7 = vector.broadcast %4 : vector<8x1xf32> to vector<8x128xf32>
    %8 = vector.broadcast %6 : vector<1x128xf32> to vector<8x128xf32>
    %9 = arith.addf %7, %8 : vector<8x128xf32>
    %cst_6 = arith.constant 2.000000e+00 : f32
    %10 = vector.broadcast %cst_6 : f32 to vector<8x128xf32>
    %11 = arith.mulf %10, %5 : vector<8x128xf32>
    %12 = arith.subf %9, %11 : vector<8x128xf32>
    %cst_7 = arith.constant 0.000000e+00 : f32
    %13 = vector.broadcast %cst_7 : f32 to vector<8x128xf32>
    %14 = arith.maximumf %12, %13 : vector<8x128xf32>
    %c0_8 = arith.constant 0 : index
    %c0_9 = arith.constant 0 : index
    %15 = vector.load %arg4[%c0_8, %c0_9] : memref<1x128xf32, #tpu.memory_space<vmem>>, vector<1x128xf32>
    %16 = vector.broadcast %15 : vector<1x128xf32> to vector<8x128xf32>
    %17 = arith.mulf %14, %16 : vector<8x128xf32>
    %18 = math.exp %17 : vector<8x128xf32>
    %c0_10 = arith.constant 0 : index
    %c0_11 = arith.constant 0 : index
    %19 = vector.load %arg5[%c0_10, %c0_11] : memref<128x128xf32, #tpu.memory_space<vmem>>, vector<128x128xf32>
    %cst_12 = arith.constant dense<0.000000e+00> : vector<8x128xf32>
    %20 = tpu.matmul %18, %19, %cst_12 {dimension_numbers = #tpu.dot_dimension_numbers<[1], [1], [0], [0], [0, 0, 1, 0], [], []>} : vector<8x128xf32>, vector<128x128xf32>, vector<8x128xf32> -> vector<8x128xf32>
    %c0_13 = arith.constant 0 : index
    %c0_14 = arith.constant 0 : index
    %21 = vector.load %arg6[%c0_13, %c0_14] : memref<1x128xf32, #tpu.memory_space<vmem>>, vector<1x128xf32>
    %22 = vector.broadcast %21 : vector<1x128xf32> to vector<8x128xf32>
    %23 = arith.addf %20, %22 : vector<8x128xf32>
    %c0_15 = arith.constant 0 : index
    %c0_16 = arith.constant 0 : index
    %24 = vector.load %arg7[%c0_15, %c0_16] : memref<8x128xf32, #tpu.memory_space<vmem>>, vector<8x128xf32>
    tpu.vector_store %arg7[%c0_15, %c0_16], %23 {strides = array<i32>} : memref<8x128xf32, #tpu.memory_space<vmem>>, vector<8x128xf32>,
    return
  }
  func.func @transform_0(%arg0: i32) -> (i32, i32) {
    %c0_i32 = arith.constant 0 : i32
    %c0_i32_0 = arith.constant 0 : i32
    return %arg0, %c0_i32 : i32, i32
  }
  func.func @transform_1(%arg0: i32) -> (i32, i32) {
    %c0_i32 = arith.constant 0 : i32
    %c0_i32_0 = arith.constant 0 : i32
    %c0_i32_1 = arith.constant 0 : i32
    return %c0_i32, %c0_i32_0 : i32, i32
  }
  func.func @transform_2(%arg0: i32) -> (i32, i32) {
    %c0_i32 = arith.constant 0 : i32
    %c0_i32_0 = arith.constant 0 : i32
    %c0_i32_1 = arith.constant 0 : i32
    return %c0_i32, %c0_i32_0 : i32, i32
  }
  func.func @transform_3(%arg0: i32) -> (i32, i32) {
    %c0_i32 = arith.constant 0 : i32
    %c0_i32_0 = arith.constant 0 : i32
    %c0_i32_1 = arith.constant 0 : i32
    return %c0_i32, %c0_i32_0 : i32, i32
  }
  func.func @transform_4(%arg0: i32) -> (i32, i32) {
    %c0_i32 = arith.constant 0 : i32
    %c0_i32_0 = arith.constant 0 : i32
    %c0_i32_1 = arith.constant 0 : i32
    return %c0_i32, %c0_i32_0 : i32, i32
  }
  func.func @transform_5(%arg0: i32) -> (i32, i32) {
    %c0_i32 = arith.constant 0 : i32
    %c0_i32_0 = arith.constant 0 : i32
    %c0_i32_1 = arith.constant 0 : i32
    return %c0_i32, %c0_i32_0 : i32, i32
  }
  func.func @transform_6(%arg0: i32) -> (i32, i32) {
    %c0_i32 = arith.constant 0 : i32
    %c0_i32_0 = arith.constant 0 : i32
    return %arg0, %c0_i32 : i32, i32
  }
}

</mosaic_0001>

<bundles_post_ra>
// kernel: tpu_custom_call.1
= control target key start
LH: loop header
LB: loop body
LE: loop exit
PB: predicated region body
PF: predicated region fallthrough
CT: control target
= control target key end

     0   :  { %vm42_vm0 = vcmask 130048   ;;  %s403_s0 = inlined_call_operand.vmem [shape: f32[8,16], index: 0, kind: input, shape index: {}]   ;;  %s404_s1 = inlined_call_operand.vmem [shape: f32[128,16], index: 1, kind: input, shape index: {}]   ;;  %s405_s2 = inlined_call_operand.vmem [shape: f32[1,128], index: 2, kind: input, shape index: {}]   ;;  %s406_s3 = inlined_call_operand.vmem [shape: f32[1,128], index: 3, kind: input, shape index: {}]   ;;  %s407_s4 = inlined_call_operand.vmem [shape: f32[128,128], index: 4, kind: input, shape index: {}]   ;;  %s408_s5 = inlined_call_operand.vmem [shape: f32[1,128], index: 5, kind: input, shape index: {}]   ;;  %s409_s6 = inlined_call_operand.hbm [shape: f32[8,128], index: 6, kind: output, shape index: {}]  }
   0x1   :  { %v40_v0 = vld [vmem:[%s404_s1 + $0x78] sm:$0xff]  ;;  %v39_v1 = vld [vmem:[%s404_s1 + $0x70] sm:$0xff] }
   0x2   :  { %189 = vmatpush.xpose.msk.msra.mxu0 %vm42_vm0, %v40_v0 }
   0x3   :  { %11 = vsyncpa [#allocation3], 0  ;;  %v38_v2 = vld [vmem:[%s404_s1 + $0x68] sm:$0xff]  ;;  %v37_v3 = vld [vmem:[%s404_s1 + $0x60] sm:$0xff]  ;;  %s180_s20 = sshll.u32 %s409_s6, 4  ;;  %s181_s20 = int_to_ptr.hbm [resolvable:$true] %s180_s20 }
   0x4   :  { %v36_v4 = vld [vmem:[%s404_s1 + $0x58] sm:$0xff]  ;;  %v35_v5 = vld [vmem:[%s404_s1 + $0x50] sm:$0xff]  ;;  %v34_v6 = vld [vmem:[%s404_s1 + $0x48] sm:$0xff] }
   0x5   :  { %v33_v7 = vld [vmem:[%s404_s1 + $0x40] sm:$0xff]  ;;  %v32_v8 = vld [vmem:[%s404_s1 + $0x38] sm:$0xff]  ;;  %v31_v12 = vld [vmem:[%s404_s1 + $0x30] sm:$0xff] }
   0x6   :  { %190 = vmatpush.xpose.msk.msra.mxu0 %vm42_vm0, %v39_v1  ;;  %v24_v9 = vld [vmem:[%s403_s0] sm:$0xff]  ;;  %v147_v11 = vld [vmem:[%s407_s4 + $0x78] sm:$0xff]  ;;  %v146_v14 = vld [vmem:[%s407_s4 + $0x70] sm:$0xff] }
   0x7   :  { %v41_v10 = vmul.f32 %v24_v9, %v24_v9  ;;  %152 = vmatpush.xpose.msra.mxu1 %v147_v11  ;;  %v30_v15 = vld [vmem:[%s404_s1 + $0x28] sm:$0xff]  ;;  %v29_v17 = vld [vmem:[%s404_s1 + $0x20] sm:$0xff]  ;;  %v28_v19 = vld [vmem:[%s404_s1 + $0x18] sm:$0xff] }
   0x8   :  { %v145_v16 = vld [vmem:[%s407_s4 + $0x68] sm:$0xff]  ;;  %v144_v18 = vld [vmem:[%s407_s4 + $0x60] sm:$0xff]  ;;  %v143_v20 = vld [vmem:[%s407_s4 + $0x58] sm:$0xff] }
   0x9   :  { %v43_v13 = vsel %vm42_vm0, %v41_v10, 0.0  ;;  %v27_v21 = vld [vmem:[%s404_s1 + $0x10] sm:$0xff]  ;;  %v26_v23 = vld [vmem:[%s404_s1 + $0x8] sm:$0xff]  ;;  %v25_v25 = vld [vmem:[%s404_s1] sm:$0xff] }
   0xa   :  { %191 = vmatpush.xpose.msk.msra.mxu0 %vm42_vm0, %v38_v2  ;;  %44 = vadd.xlane.f32.xlu0 %v43_v13  ;;  %v142_v22 = vld [vmem:[%s407_s4 + $0x50] sm:$0xff]  ;;  %v141_v24 = vld [vmem:[%s407_s4 + $0x48] sm:$0xff]  ;;  %v140_v26 = vld [vmem:[%s407_s4 + $0x40] sm:$0xff] }
   0xb   :  { %153 = vmatpush.xpose.msra.mxu1 %v146_v14  ;;  %v139_v27 = vld [vmem:[%s407_s4 + $0x38] sm:$0xff]  ;;  %v138_v28 = vld [vmem:[%s407_s4 + $0x30] sm:$0xff]  ;;  %v137_v29 = vld [vmem:[%s407_s4 + $0x28] sm:$0xff] }
   0xc   :  { %v136_v30 = vld [vmem:[%s407_s4 + $0x20] sm:$0xff]  ;;  %v135_v31 = vld [vmem:[%s407_s4 + $0x18] sm:$0xff]  ;;  %v134_v32 = vld [vmem:[%s407_s4 + $0x10] sm:$0xff] }
   0xd   :  { %v133_v33 = vld [vmem:[%s407_s4 + $0x8] sm:$0xff]  ;;  %v132_v34 = vld [vmem:[%s407_s4] sm:$0xff] }
   0xe   :  { %192 = vmatpush.xpose.msk.msra.mxu0 %vm42_vm0, %v37_v3  ;;  %v207_v35 = vld [vmem:[%s405_s2] ss:$0 sm:$0xff]  ;;  %s238_s2 = smov [#allocation2]  }
   0xf   :  { %154 = vmatpush.xpose.msra.mxu1 %v145_v16  ;;  %v208_v41 = vld [vmem:[%s406_s3] ss:$0 sm:$0xff]  ;;  %s178_s17 = sshll.u32 %s238_s2, 4  ;;  %s179_s17 = int_to_ptr.vmem [resolvable:$true] %s178_s17 }
  0x10   :  { %v209_v46 = vld [vmem:[%s408_s5] ss:$0 sm:$0xff] }
  0x12   :  { %193 = vmatpush.xpose.msk.msra.mxu0 %vm42_vm0, %v36_v4 }
  0x13   :  { %155 = vmatpush.xpose.msra.mxu1 %v144_v18 }
  0x16   :  { %194 = vmatpush.xpose.msk.msra.mxu0 %vm42_vm0, %v35_v5 }
  0x17   :  { %156 = vmatpush.xpose.msra.mxu1 %v143_v20 }
  0x1a   :  { %195 = vmatpush.xpose.msk.msra.mxu0 %vm42_vm0, %v34_v6 }
  0x1b   :  { %157 = vmatpush.xpose.msra.mxu1 %v142_v22 }
  0x1e   :  { %196 = vmatpush.xpose.msk.msra.mxu0 %vm42_vm0, %v33_v7 }
  0x1f   :  { %158 = vmatpush.xpose.msra.mxu1 %v141_v24 }
  0x22   :  { %197 = vmatpush.xpose.msk.msra.mxu0 %vm42_vm0, %v32_v8 }
  0x23   :  { %159 = vmatpush.xpose.msra.mxu1 %v140_v26 }
  0x26   :  { %198 = vmatpush.xpose.msk.msra.mxu0 %vm42_vm0, %v31_v12 }
  0x27   :  { %160 = vmatpush.xpose.msra.mxu1 %v139_v27 }
  0x2a   :  { %199 = vmatpush.xpose.msk.msra.mxu0 %vm42_vm0, %v30_v15 }
  0x2b   :  { %161 = vmatpush.xpose.msra.mxu1 %v138_v28 }
  0x2e   :  { %200 = vmatpush.xpose.msk.msra.mxu0 %vm42_vm0, %v29_v17 }
  0x2f   :  { %162 = vmatpush.xpose.msra.mxu1 %v137_v29 }
  0x32   :  { %201 = vmatpush.xpose.msk.msra.mxu0 %vm42_vm0, %v28_v19 }
  0x33   :  { %163 = vmatpush.xpose.msra.mxu1 %v136_v30 }
  0x36   :  { %202 = vmatpush.xpose.msk.msra.mxu0 %vm42_vm0, %v27_v21 }
  0x37   :  { %164 = vmatpush.xpose.msra.mxu1 %v135_v31 }
  0x3a   :  { %203 = vmatpush.xpose.msk.msra.mxu0 %vm42_vm0, %v26_v23 }
  0x3b   :  { %165 = vmatpush.xpose.msra.mxu1 %v134_v32 }
  0x3e   :  { %204 = vmatpush.xpose.msk.msra.mxu0 %vm42_vm0, %v25_v25 }
  0x3f   :  { %166 = vmatpush.xpose.msra.mxu1 %v133_v33 }
  0x41   :  { %205 = vmatmul.msk.f32.vlgmr.msra.gmra.mxu0 %vm42_vm0, %v24_v9 }
  0x43   :  { %167 = vmatpush.xpose.msra.mxu1 %v132_v34 }
  0x7d   :  { %v45_v36 = vpop.xlane.xlu0 %44 }
  0x7e   :  { %v121_v37 = vadd.f32 %v207_v35, %v45_v36 }
  0xbe   :  { %v114_v38 = vpop.f32.mrf.mxu0 }
  0xbf   :  { %v122_v39 = vmul.f32 2.0, %v114_v38 }
  0xc1   :  { %v123_v40 = vsub.f32 %v121_v37, %v122_v39 }
  0xc3   :  { %v124_v42 = vmax.f32 %v123_v40, 0.0 }
  0xc5   :  { %v129_v43 = vmul.f32 %v208_v41, %v124_v42 }
  0xc7   :  { %v130_v44 = vmul.f32 1.442695, %v129_v43 }
  0xc9   :  { %210 = vpow2.f32 %v130_v44 }
  0xcf   :  { %v211_v45 = vpop.eup %210 }
  0xd0   :  { %168 = vmatmul.f32.vlgmr.msra.gmra.mxu1 %v211_v45 }
 0x14d   :  { %v169_v47 = vpop.f32.mrf.mxu1 }
 0x14e   :  { %v170_v48 = vadd.f32 %v209_v46, %v169_v47 }
 0x150   :  { %172 = vst [vmem:[#allocation2] sm:$0xff] %v170_v48 }
 0x151   :  { %183 = dma.vmem_to_hbm [thread:$0]  %s179_s17, 128, %s181_s20, [#allocation3]  }
 0x152   :  { %236 = dma.done.wait [#allocation3], 128  }
 0x153   :  { %237 = vsyncadd [#allocation3], 4294967168 }
 0x154   :  { %188 = vsyncpa [#allocation3], 1 }

</bundles_post_ra>
